<compile_context>
chip_gen: v5e
topology: v5e:2x2
jax: 0.10.0
libtpu: 0.0.40
codegen_flags: <defaults>
</compile_context>

<pallas_src>
import jax
import jax.numpy as jnp
from jax.experimental import pallas as pl
from jax.experimental.pallas import tpu as pltpu

_LANE = 128
_EPS = 1e-05
_TARGET_BLOCK_BYTES = 8 * 1024 * 1024     # x-tile byte target (per buffer)
_MIN_BLOCK_BYTES = 512 * 1024             # don't shatter blocks below this
_MIN_COL_BYTES = 2048                     # reject <2 KiB strided DMA rows
_MAX_PARAM_BLOCK_BYTES = 2 * 1024 * 1024  # VMEM budget for the padded param tile
_MIN_STEPS = 8                            # >= 4 steps per core on megacore parts


# ----------------------------- kernels ------------------------------------ #

def _bn_row_param_kernel(x_ref, p_ref, o_ref):
    # x: (tile_r, tile_c); p: (tile_r, 2) f32 -> [scale | shift] per row.
    x = x_ref[...].astype(jnp.float32)
    p = p_ref[...]
    scale = p[:, 0:1]
    shift = p[:, 1:2]
    o_ref[...] = (x * scale + shift).astype(o_ref.dtype)


def _bn_lane_param_kernel(x_ref, p_ref, o_ref):
    # x: (tile_r, tile_c); p: (2, tile_c) f32 -> row 0 = scale, row 1 = shift.
    x = x_ref[...].astype(jnp.float32)
    p = p_ref[...]
    scale = p[0:1, :]
    shift = p[1:2, :]
    o_ref[...] = (x * scale + shift).astype(o_ref.dtype)


# --------------------------- tiling helpers -------------------------------- #

def _physical_vmem_bytes():
    """Best-effort physical VMEM per TensorCore; conservative fallback."""
    try:
        info = pltpu.get_tpu_info()
        v = int(getattr(info, "vmem_capacity_bytes", 0) or 0)
        if v >= (16 << 20):
            return v
    except Exception:
        pass
    return 64 << 20  # v7x per-core size; safe lower bound for v5e/v6e too


def _pick_dim_tile(size, unit, cap, floor):
    """Pick a tile along one dim.

    Returns (tile, n_blocks) with n_blocks = ceil(size / tile).  The tile is
    either the full dim (size) or a multiple of `unit` in [floor, cap].
    Exact divisors of `size` are preferred; otherwise a non-dividing tile is
    used (Pallas pads the trailing block on reads / masks it on writes).
    """
    if size <= cap:
        return size, 1
    cap = max(unit, (cap // unit) * unit)
    floor = min(cap, max(unit, floor))
    best = None
    if size % unit == 0:
        t = unit
        lim = min(size, cap)
        while t <= lim:
            if size % t == 0:
                best = t
            t += unit
    if best is not None and best >= floor:
        return best, size // best
    return cap, pl.cdiv(size, cap)


def _boost_steps(rows, cols, itemsize, sublane_unit, col_floor,
                 tile_r, n_r, tile_c, n_c):
    """Shrink tiles (rows first) until the grid has >= _MIN_STEPS steps,
    but never below _MIN_BLOCK_BYTES per block.  Tiny inputs are left alone."""
    if rows * cols * itemsize < _MIN_STEPS * _MIN_BLOCK_BYTES:
        return tile_r, n_r, tile_c, n_c
    min_block_elems = max(sublane_unit * _LANE, _MIN_BLOCK_BYTES // itemsize)

    if n_r * n_c < _MIN_STEPS:
        want_r = pl.cdiv(_MIN_STEPS, n_c)
        cap_r = max(rows // want_r, pl.cdiv(min_block_elems, tile_c))
        cap_r = max(sublane_unit, (cap_r // sublane_unit) * sublane_unit)
        if cap_r < tile_r:
            tile_r, n_r = _pick_dim_tile(rows, sublane_unit, cap_r, sublane_unit)

    if n_r * n_c < _MIN_STEPS and cols % _LANE == 0:
        want_c = pl.cdiv(_MIN_STEPS, n_r)
        cap_c = max(cols // want_c, col_floor, pl.cdiv(min_block_elems, tile_r))
        cap_c = max(_LANE, (cap_c // _LANE) * _LANE)
        if cap_c < tile_c:
            tile_c, n_c = _pick_dim_tile(cols, _LANE, cap_c, col_floor)

    return tile_r, n_r, tile_c, n_c


def _vmem_limit(blk_x_bytes, blk_p_bytes, phys_vmem):
    # double-buffered x-in + out + params, plus headroom for internal scratch.
    needed = 2 * (2 * blk_x_bytes + blk_p_bytes)
    limit = int(needed * 1.25) + (4 << 20)
    limit = max(limit, 16 << 20)
    cap = max(24 << 20, (phys_vmem * 5) // 8)     # ~40 MiB on v7x, ~80 MiB on v5e/v6e
    return min(limit, cap)


# --------------------------- pallas_call paths ----------------------------- #

def _bn_row_params(x2, params, target_block_bytes, phys_vmem):
    """x2: (N*C, H*W); params: (N*C, 2) f32 [scale | shift]."""
    rows, cols = x2.shape
    itemsize = jnp.dtype(x2.dtype).itemsize
    sublane_unit = 8 * max(1, 4 // itemsize)
    target_elems = max(target_block_bytes // itemsize, sublane_unit * _LANE)

    col_floor = max(_LANE, _MIN_COL_BYTES // itemsize)
    col_cap = max(_LANE, target_elems // sublane_unit)
    tile_c, n_c = _pick_dim_tile(cols, _LANE, col_cap, col_floor)

    # Byte cap on the x block + keep the lane-padded (tile_r, 2) param tile small.
    row_cap = max(sublane_unit, target_elems // tile_c)
    row_cap = min(row_cap, max(sublane_unit, _MAX_PARAM_BLOCK_BYTES // (_LANE * 4)))
    tile_r, n_r = _pick_dim_tile(rows, sublane_unit, row_cap, sublane_unit)

    tile_r, n_r, tile_c, n_c = _boost_steps(
        rows, cols, itemsize, sublane_unit, col_floor, tile_r, n_r, tile_c, n_c)

    # rows outer, cols inner: the param block index is constant across the
    # inner column sweep, so its DMA is skipped on revisits.
    grid = (n_r, n_c)
    x_spec = pl.BlockSpec((tile_r, tile_c), lambda i, j: (i, j))
    p_spec = pl.BlockSpec((tile_r, 2), lambda i, j: (i, 0))

    vmem_limit = _vmem_limit(tile_r * tile_c * itemsize, tile_r * _LANE * 4,
                             phys_vmem)

    return pl.pallas_call(
        _bn_row_param_kernel,
        out_shape=jax.ShapeDtypeStruct((rows, cols), x2.dtype),
        grid=grid,
        in_specs=[x_spec, p_spec],
        out_specs=x_spec,
        compiler_params=pltpu.CompilerParams(
            dimension_semantics=("parallel", "parallel"),
            vmem_limit_bytes=vmem_limit,
        ),
    )(x2, params)


def _bn_lane_params(x2, params, target_block_bytes, phys_vmem):
    """x2: (N, C*H*W); params: (2, C*H*W) f32 (scale row, shift row)."""
    rows, cols = x2.shape
    itemsize = jnp.dtype(x2.dtype).itemsize
    sublane_unit = 8 * max(1, 4 // itemsize)
    target_elems = max(target_block_bytes // itemsize, sublane_unit * _LANE)

    col_floor = max(_LANE, _MIN_COL_BYTES // itemsize)
    eff_rows = max(1, min(rows, sublane_unit))
    col_cap = max(_LANE, target_elems // eff_rows)
    # keep the sublane-padded (2, tile_c) param tile within budget
    col_cap = min(col_cap, max(_LANE, _MAX_PARAM_BLOCK_BYTES // (8 * 4)))
    tile_c, n_c = _pick_dim_tile(cols, _LANE, col_cap, col_floor)

    row_cap = max(sublane_unit, target_elems // tile_c)
    tile_r, n_r = _pick_dim_tile(rows, sublane_unit, row_cap, sublane_unit)

    tile_r, n_r, tile_c, n_c = _boost_steps(
        rows, cols, itemsize, sublane_unit, col_floor, tile_r, n_r, tile_c, n_c)

    # cols outer, rows (N) inner: the param block index is constant across the
    # inner N sweep, so the per-element param row is fetched once per column
    # block and reused for every image in the batch.
    grid = (n_c, n_r)
    x_spec = pl.BlockSpec((tile_r, tile_c), lambda c, r: (r, c))
    p_spec = pl.BlockSpec((2, tile_c), lambda c, r: (0, c))

    vmem_limit = _vmem_limit(tile_r * tile_c * itemsize, 8 * tile_c * 4,
                             phys_vmem)

    return pl.pallas_call(
        _bn_lane_param_kernel,
        out_shape=jax.ShapeDtypeStruct((rows, cols), x2.dtype),
        grid=grid,
        in_specs=[x_spec, p_spec],
        out_specs=x_spec,
        compiler_params=pltpu.CompilerParams(
            dimension_semantics=("parallel", "parallel"),
            vmem_limit_bytes=vmem_limit,
        ),
    )(x2, params)


# ------------------------------ public API --------------------------------- #

def frozen_batch_norm_2d(x, weight, bias, running_mean, running_var):
    """x: (N, C, H, W); params: (C,). Returns (N, C, H, W) in x.dtype."""
    assert x.ndim == 4, "expected NCHW input"
    if not jnp.issubdtype(x.dtype, jnp.floating):
        raise TypeError("frozen_batch_norm_2d expects a floating-point input")

    N, C, H, W = x.shape
    cols = H * W
    itemsize = jnp.dtype(x.dtype).itemsize

    # Fold the four per-channel buffers into (scale, shift) once, in f32.
    w32 = weight.astype(jnp.float32)
    b32 = bias.astype(jnp.float32)
    rm32 = running_mean.astype(jnp.float32)
    rv32 = running_var.astype(jnp.float32)
    scale_c = w32 * jax.lax.rsqrt(rv32 + _EPS)    # (C,)
    shift_c = b32 - rm32 * scale_c                # (C,)

    phys_vmem = _physical_vmem_bytes()
    target_block_bytes = min(_TARGET_BLOCK_BYTES, max(1 << 20, phys_vmem // 8))

    # Lane-dense path for non-128-multiple spatial sizes: only when the padded
    # lane fraction (masked-store waste) exceeds the extra per-element param
    # read traffic (8 bytes per element-column, amortized over the N axis).
    pad_frac = 1.0 - cols / float(pl.cdiv(cols, _LANE) * _LANE)
    param_frac = 8.0 / (2.0 * N * itemsize)
    use_lane_dense = (
        cols % _LANE != 0 and (C * cols) % _LANE == 0 and param_frac < pad_frac
    )

    if use_lane_dense:
        x2 = x.reshape(N, C * cols)
        params = jnp.stack(
            [jnp.repeat(scale_c, cols), jnp.repeat(shift_c, cols)], axis=0
        )  # (2, C*H*W) f32
        out2 = _bn_lane_params(x2, params, target_block_bytes, phys_vmem)
    else:
        x2 = x.reshape(N * C, cols)
        params = jnp.stack(
            [jnp.tile(scale_c, (N,)), jnp.tile(shift_c, (N,))], axis=1
        )  # (N*C, 2) f32, row r = n*C + c -> channel c
        out2 = _bn_row_params(x2, params, target_block_bytes, phys_vmem)

    return out2.reshape(N, C, H, W)


# --------------------------------- test ------------------------------------ #

if __name__ == "__main__":
    key = jax.random.PRNGKey(0)

    def ref_bn(x, w, b, rm, rv):
        w4 = w.reshape(1, -1, 1, 1)
        b4 = b.reshape(1, -1, 1, 1)
        rv4 = rv.reshape(1, -1, 1, 1)
        rm4 = rm.reshape(1, -1, 1, 1)
        scale = w4 * jax.lax.rsqrt(rv4 + _EPS)
        shift = b4 - rm4 * scale
        return x * scale + shift

    def run_case(k, N, C, H, W):
        kx, kw, kb, km, kv = jax.random.split(k, 5)
        x = jax.random.normal(kx, (N, C, H, W), dtype=jnp.float32)
        weight = jnp.ones((C,), jnp.float32) + 0.1 * jax.random.normal(kw, (C,))
        bias = jnp.zeros((C,), jnp.float32) + 0.1 * jax.random.normal(kb, (C,))
        running_mean = 0.1 * jax.random.normal(km, (C,))
        running_var = jnp.ones((C,), jnp.float32) + 0.05 * jnp.abs(
            jax.random.normal(kv, (C,)))
        out = frozen_batch_norm_2d(x, weight, bias, running_mean, running_var)
        out = jax.block_until_ready(out)
        ref = ref_bn(x, weight, bias, running_mean, running_var)
        assert out.shape == x.shape
        assert out.dtype == x.dtype
        assert jnp.allclose(out, ref, atol=1e-5, rtol=1e-5)

    k1, k2, k3 = jax.random.split(key, 3)
    run_case(k1, 2, 4, 16, 16)    # lane-aligned (H*W % 128 == 0) row-param path
    run_case(k2, 2, 128, 7, 7)    # lane-dense (N, C*H*W) path for 7x7 maps
    run_case(k3, 2, 3, 5, 5)      # fully non-aligned fallback (masked lanes)

    print("KERNEL_OK")
</pallas_src>

<mosaic_0001>
module attributes {stable_mosaic.version = 11 : i64} {
  func.func @_bn_row_param_kernel(%arg0: i32, %arg1: i32, %arg2: memref<8x256xf32, #tpu.memory_space<vmem>>, %arg3: memref<8x2xf32, #tpu.memory_space<vmem>>, %arg4: memref<8x256xf32, #tpu.memory_space<vmem>>) attributes {dimension_semantics = [#tpu.dimension_semantics<parallel>, #tpu.dimension_semantics<parallel>], iteration_bounds = array<i64: 1, 1>, scalar_prefetch = 0 : i64, scratch_operands = 0 : i64, tpu.core_type = #tpu.core_type<tc>, window_params = [{transform_indices = @transform_0, window_bounds = array<i64: 8, 256>}, {transform_indices = @transform_1, window_bounds = array<i64: 8, 2>}, {transform_indices = @transform_2, window_bounds = array<i64: 8, 256>}]} {
    %c0 = arith.constant 0 : index
    %c0_0 = arith.constant 0 : index
    %0 = vector.load %arg2[%c0, %c0_0] : memref<8x256xf32, #tpu.memory_space<vmem>>, vector<8x256xf32>
    %c0_1 = arith.constant 0 : index
    %c0_2 = arith.constant 0 : index
    %1 = vector.load %arg3[%c0_1, %c0_2] : memref<8x2xf32, #tpu.memory_space<vmem>>, vector<8x2xf32>
    %2 = vector.extract_strided_slice %1 {offsets = [0, 0], sizes = [8, 1], strides = [1, 1]} : vector<8x2xf32> to vector<8x1xf32>
    %3 = vector.extract_strided_slice %1 {offsets = [0, 1], sizes = [8, 1], strides = [1, 1]} : vector<8x2xf32> to vector<8x1xf32>
    %4 = vector.broadcast %2 : vector<8x1xf32> to vector<8x256xf32>
    %5 = arith.mulf %0, %4 : vector<8x256xf32>
    %6 = vector.broadcast %3 : vector<8x1xf32> to vector<8x256xf32>
    %7 = arith.addf %5, %6 : vector<8x256xf32>
    %c0_3 = arith.constant 0 : index
    %c0_4 = arith.constant 0 : index
    %8 = vector.load %arg4[%c0_3, %c0_4] : memref<8x256xf32, #tpu.memory_space<vmem>>, vector<8x256xf32>
    tpu.vector_store %arg4[%c0_3, %c0_4], %7 {strides = array<i32>} : memref<8x256xf32, #tpu.memory_space<vmem>>, vector<8x256xf32>,
    return
  }
  func.func @transform_0(%arg0: i32, %arg1: i32) -> (i32, i32) {
    %c0_i32 = arith.constant 0 : i32
    return %arg0, %arg1 : i32, i32
  }
  func.func @transform_1(%arg0: i32, %arg1: i32) -> (i32, i32) {
    %c0_i32 = arith.constant 0 : i32
    %c0_i32_0 = arith.constant 0 : i32
    return %arg0, %c0_i32 : i32, i32
  }
  func.func @transform_2(%arg0: i32, %arg1: i32) -> (i32, i32) {
    %c0_i32 = arith.constant 0 : i32
    return %arg0, %arg1 : i32, i32
  }
}

</mosaic_0001>

<bundles_post_ra>
// kernel: tpu_custom_call.1
= control target key start
LH: loop header
LB: loop body
LE: loop exit
PB: predicated region body
PF: predicated region fallthrough
CT: control target
= control target key end

     0   :  { %7 = vsyncpa [#allocation3], 0  ;;  %s147_s0 = inlined_call_operand.hbm [shape: f32[8,256], index: 0, kind: input, shape index: {}]   ;;  %s148_s1 = inlined_call_operand.vmem [shape: f32[8,2], index: 1, kind: input, shape index: {}]   ;;  %s149_s2 = inlined_call_operand.hbm [shape: f32[8,256], index: 2, kind: output, shape index: {}]  }
   0x1   :  { %8 = vsyncpa [#allocation4], 0  ;;  %s14_s11 = sshll.u32 %s147_s0, 4  ;;  %s119_s12 = smov [#allocation2]   ;;  %s15_s11 = int_to_ptr.hbm [resolvable:$true] %s14_s11 }
   0x2   :  { %s16_s13 = sshll.u32 %s119_s12, 4  ;;  %s17_s13 = int_to_ptr.vmem [resolvable:$true] %s16_s13 }
   0x3   :  { %19 = dma.hbm_to_vmem [thread:$0]  %s15_s11, 256, %s17_s13, [#allocation3]  }
   0x4   :  { %115 = dma.done.wait [#allocation3], 256  }
   0x5   :  { %116 = vsyncadd [#allocation3], 4294967040  ;;  %v120_v0 = vmov 0   ;;  %v28_v1 = vld [vmem:[%s148_s1] sm:$0xff]  ;;  %v121_v2 = vmov 1   ;;  %v27_v5 = vld [vmem:[#allocation2 + $0x8] sm:$0xff] }
   0x6   :  { %65 = vset.pattern.permute.xlu0 %v120_v0  ;;  %v26_v4 = vld [vmem:[#allocation2] sm:$0xff]  ;;  %s122_s0 = smov [#allocation5]   ;;  %s51_s19 = sshll.u32 %s149_s2, 4  ;;  %s52_s19 = int_to_ptr.hbm [resolvable:$true] %s51_s19 }
   0x7   :  { %31 = vperm.xlu0 %65, %v28_v1   ;;  %s49_s16 = sshll.u32 %s122_s0, 4  ;;  %s50_s16 = int_to_ptr.vmem [resolvable:$true] %s49_s16 }
   0xf   :  { %66 = vset.pattern.permute.xlu0 %v121_v2 }
  0x10   :  { %37 = vperm.xlu0 %66, %v28_v1  }
  0x79   :  { %v32_v3 = vpop.permute.xlu0 %31 }
  0x7a   :  { %v34_v6 = vmul.f32 %v32_v3, %v26_v4  ;;  %v35_v7 = vmul.f32 %v32_v3, %v27_v5 }
  0x82   :  { %v38_v8 = vpop.permute.xlu0 %37 }
  0x83   :  { %v40_v9 = vadd.f32 %v38_v8, %v34_v6  ;;  %v41_v10 = vadd.f32 %v38_v8, %v35_v7 }
  0x85   :  { %42 = vst [vmem:[#allocation5] sm:$0xff] %v40_v9 }
  0x86   :  { %43 = vst [vmem:[#allocation5 + $0x8] sm:$0xff] %v41_v10 }
  0x87   :  { %54 = dma.vmem_to_hbm [thread:$0]  %s50_s16, 256, %s52_s19, [#allocation4]  }
  0x88   :  { %117 = dma.done.wait [#allocation4], 256  }
  0x89   :  { %118 = vsyncadd [#allocation4], 4294967040 }
  0x8a   :  { %59 = vsyncpa [#allocation3], 1 }
  0x8b   :  { %60 = vsyncpa [#allocation4], 1 }

</bundles_post_ra>
